<compile_context>
chip_gen: v5e
topology: v5e:2x2
jax: 0.10.0
libtpu: 0.0.40
codegen_flags: <defaults>
</compile_context>

<pallas_src>
import functools

import jax
import jax.numpy as jnp
from jax.experimental import pallas as pl
from jax.experimental.pallas import tpu as pltpu


def _round_up(x, m):
    return (x + m - 1) // m * m


# ---------------------------------------------------------------------------
# Kernel 1: support = features @ weight
# ---------------------------------------------------------------------------
def _support_kernel(feat_ref, w_ref, out_ref):
    # features arrive in f32 straight from HBM; a single in-kernel cast feeds
    # the MXU (no wrapper-side cast pass).  Accumulate in f32, store bf16.
    out_ref[...] = jnp.dot(
        feat_ref[...].astype(jnp.bfloat16), w_ref[...],
        preferred_element_type=jnp.float32,
    ).astype(out_ref.dtype)


# ---------------------------------------------------------------------------
# Kernel 2: output = relu(adj @ support), k (adj columns) is the reduction
# axis and the innermost grid dimension.
# ---------------------------------------------------------------------------
def _aggregate_kernel(adj_ref, sup_ref, out_ref, *, tk, apply_relu,
                      resident_support):
    k = pl.program_id(1)

    # adj streams as f32; one f32->bf16 convert per tile right before the MXU
    # (a single VPU convert, hidden under the DMA on v5e/v6e/v7x).
    adj_b = adj_ref[...].astype(jnp.bfloat16)

    if resident_support:
        off = pl.multiple_of(k * tk, tk)
        s_blk = sup_ref[pl.ds(off, tk), :]
    else:
        s_blk = sup_ref[...]

    partial = jnp.dot(adj_b, s_blk, preferred_element_type=jnp.float32)

    # Accumulate directly into the f32 output block: its block index (i, 0)
    # does not depend on k, so it stays VMEM-resident across the reduction.
    @pl.when(k == 0)
    def _():
        out_ref[...] = partial

    @pl.when(k > 0)
    def _():
        out_ref[...] += partial

    if apply_relu:
        @pl.when(k == pl.num_programs(1) - 1)
        def _():
            out_ref[...] = jnp.maximum(out_ref[...], 0.0)


def gnn_layer_forward(features, adj, weight, active=True, *,
                      tm=512, tk=512, compute_dtype=jnp.bfloat16):
    """GNNLayer.forward: relu(adj @ (features @ weight))."""
    N, f_in = features.shape
    f_in2, f_out = weight.shape
    assert f_in == f_in2
    assert adj.shape == (N, N)

    # Lane-dense output: pad f_out to a multiple of 128 so stores are full
    # width `vst` (zero columns stay zero through matmul+ReLU; sliced off).
    f_out_pad = _round_up(f_out, 128)

    # Clamp tiles to the problem size and TPU layout constraints.
    tm = max(8, min(tm, _round_up(N, 8)))
    tm = _round_up(tm, 8)
    tk = max(128, min(tk, _round_up(N, 128)))
    tk = _round_up(tk, 128)

    # Pad N so the row-block (tm) and reduction-block (tk) tilings divide
    # evenly.  Zero padding is exact for matmul + ReLU.  At the self-test
    # shapes no padding is added.
    n_rows = _round_up(N, tm)   # adj rows / output rows
    n_cols = _round_up(N, tk)   # adj cols == support rows

    feats_p = features
    if n_cols != N:
        feats_p = jnp.zeros((n_cols, f_in), features.dtype).at[:N].set(features)
    adj_p = adj
    if (n_rows, n_cols) != (N, N):
        adj_p = jnp.zeros((n_rows, n_cols), adj.dtype).at[:N, :N].set(adj)

    # Weight is tiny: pad + cast in the wrapper (negligible traffic).
    w_p = jnp.zeros((f_in, f_out_pad), compute_dtype).at[:, :f_out].set(
        weight.astype(compute_dtype))

    # Generation-aware VMEM budgeting (v5e/v6e: 128 MiB, v7x: 64 MiB per TC).
    try:
        vmem_cap = int(getattr(pltpu.get_tpu_info(), "vmem_capacity_bytes",
                               64 * 1024 * 1024))
    except Exception:  # conservative fallback = v7x size
        vmem_cap = 64 * 1024 * 1024

    itemsize_c = jnp.dtype(compute_dtype).itemsize
    sup_bytes = n_cols * f_out_pad * itemsize_c
    # Keep support VMEM-resident (DMA'd once, constant index_map) only if it
    # sits well under a quarter of VMEM (counting possible double-buffering);
    # otherwise stream it per k-block.
    resident_support = (2 * sup_bytes) <= (vmem_cap // 4)

    # ---------------- kernel 1: support = features @ weight ----------------
    tm_s = tk  # divides n_cols by construction, multiple of 8
    support = pl.pallas_call(
        _support_kernel,
        out_shape=jax.ShapeDtypeStruct((n_cols, f_out_pad), compute_dtype),
        grid_spec=pltpu.PrefetchScalarGridSpec(
            num_scalar_prefetch=0,
            grid=(n_cols // tm_s,),
            in_specs=[
                pl.BlockSpec((tm_s, f_in), lambda i: (i, 0)),
                pl.BlockSpec((f_in, f_out_pad), lambda i: (0, 0)),
            ],
            out_specs=pl.BlockSpec((tm_s, f_out_pad), lambda i: (i, 0)),
        ),
        compiler_params=pltpu.CompilerParams(
            dimension_semantics=("parallel",),
        ),
    )(feats_p, w_p)

    # ---------------- kernel 2: output = relu(adj @ support) ---------------
    grid = (n_rows // tm, n_cols // tk)

    adj_spec = pl.BlockSpec((tm, tk), lambda i, k: (i, k),
                            pipeline_mode=pl.Buffered(3))
    if resident_support:
        sup_spec = pl.BlockSpec((n_cols, f_out_pad), lambda i, k: (0, 0))
    else:
        sup_spec = pl.BlockSpec((tk, f_out_pad), lambda i, k: (k, 0))

    # Explicit scoped-VMEM limit computed from the actual buffer footprint.
    adj_buf = tm * tk * adj_p.dtype.itemsize * 3              # Buffered(3)
    sup_buf = (n_cols if resident_support else tk) * f_out_pad * itemsize_c * 2
    out_buf = tm * f_out_pad * 4 * 2
    need = adj_buf + sup_buf + out_buf
    vmem_limit = int(min(max(2 * need + (8 << 20), 32 << 20),
                         int(vmem_cap * 0.9)))

    kernel = functools.partial(_aggregate_kernel, tk=tk, apply_relu=active,
                               resident_support=resident_support)

    out_pad = pl.pallas_call(
        kernel,
        out_shape=jax.ShapeDtypeStruct((n_rows, f_out_pad), jnp.float32),
        grid_spec=pltpu.PrefetchScalarGridSpec(
            num_scalar_prefetch=0,
            grid=grid,
            in_specs=[adj_spec, sup_spec],
            out_specs=pl.BlockSpec((tm, f_out_pad), lambda i, k: (i, 0)),
        ),
        compiler_params=pltpu.CompilerParams(
            # Row blocks are independent (support is a plain input now), so
            # the i axis can be megacore-sharded; k is the reduction.
            dimension_semantics=("parallel", "arbitrary"),
            vmem_limit_bytes=vmem_limit,
        ),
    )(adj_p, support)

    return out_pad[:N, :f_out]


def xavier_uniform(key, in_features, out_features):
    # torch.nn.init.xavier_uniform_ on an (in_features, out_features) tensor.
    bound = jnp.sqrt(6.0 / (in_features + out_features))
    return jax.random.uniform(
        key, (in_features, out_features), jnp.float32, -bound, bound
    )


if __name__ == "__main__":
    key = jax.random.PRNGKey(0)
    k_feat, k_adj, k_w = jax.random.split(key, 3)

    # Small shapes consistent with the module: N nodes, in/out feature dims.
    N, in_features, out_features = 256, 128, 64

    features = jax.random.normal(k_feat, (N, in_features), jnp.float32)

    # Dense, row-normalized "adjacency" (stands in for torch.spmm's sparse
    # adj; the math is identical).
    raw = jax.random.uniform(k_adj, (N, N), jnp.float32)
    adj_mask = (raw > 0.9).astype(jnp.float32) + jnp.eye(N, dtype=jnp.float32)
    adj = adj_mask / jnp.sum(adj_mask, axis=1, keepdims=True)

    weight = xavier_uniform(k_w, in_features, out_features)

    out = gnn_layer_forward(features, adj, weight, active=True)
    out = jax.block_until_ready(out)

    # Reference (plain f32 JAX).  The kernel feeds the MXU bf16 operands with
    # f32 accumulation (documented precision choice), so allow a bf16-level
    # tolerance.
    ref = jnp.maximum(adj @ (features @ weight), 0.0)
    assert out.shape == (N, out_features)
    assert jnp.allclose(out, ref, atol=3e-2, rtol=3e-2), float(
        jnp.max(jnp.abs(out - ref))
    )

    # Also exercise the active=False path (no ReLU).
    out_lin = jax.block_until_ready(
        gnn_layer_forward(features, adj, weight, active=False))
    ref_lin = adj @ (features @ weight)
    assert jnp.allclose(out_lin, ref_lin, atol=3e-2, rtol=3e-2), float(
        jnp.max(jnp.abs(out_lin - ref_lin))
    )

    print("KERNEL_OK")
</pallas_src>

<mosaic_0001>
module attributes {stable_mosaic.version = 11 : i64} {
  func.func @_support_kernel(%arg0: i32, %arg1: memref<256x128xf32, #tpu.memory_space<vmem>>, %arg2: memref<128x128xbf16, #tpu.memory_space<vmem>>, %arg3: memref<256x128xbf16, #tpu.memory_space<vmem>>) attributes {dimension_semantics = [#tpu.dimension_semantics<parallel>], iteration_bounds = array<i64: 1>, scalar_prefetch = 0 : i64, scratch_operands = 0 : i64, tpu.core_type = #tpu.core_type<tc>, window_params = [{transform_indices = @transform_0, window_bounds = array<i64: 256, 128>}, {pipeline_mode = #tpu.pipeline_mode<synchronous>, transform_indices = @transform_1, window_bounds = array<i64: 128, 128>}, {transform_indices = @transform_2, window_bounds = array<i64: 256, 128>}]} {
    %c0 = arith.constant 0 : index
    %c0_0 = arith.constant 0 : index
    %0 = vector.load %arg1[%c0, %c0_0] : memref<256x128xf32, #tpu.memory_space<vmem>>, vector<256x128xf32>
    %1 = arith.truncf %0 : vector<256x128xf32> to vector<256x128xbf16>
    %c0_1 = arith.constant 0 : index
    %c0_2 = arith.constant 0 : index
    %2 = vector.load %arg2[%c0_1, %c0_2] : memref<128x128xbf16, #tpu.memory_space<vmem>>, vector<128x128xbf16>
    %cst = arith.constant dense<0.000000e+00> : vector<256x128xf32>
    %3 = tpu.matmul %1, %2, %cst {dimension_numbers = #tpu.dot_dimension_numbers<[1], [0], [0], [1], [0, 0, 1, 1], [], []>} : vector<256x128xbf16>, vector<128x128xbf16>, vector<256x128xf32> -> vector<256x128xf32>
    %4 = arith.truncf %3 : vector<256x128xf32> to vector<256x128xbf16>
    %c0_3 = arith.constant 0 : index
    %c0_4 = arith.constant 0 : index
    %5 = vector.load %arg3[%c0_3, %c0_4] : memref<256x128xbf16, #tpu.memory_space<vmem>>, vector<256x128xbf16>
    tpu.vector_store %arg3[%c0_3, %c0_4], %4 {strides = array<i32>} : memref<256x128xbf16, #tpu.memory_space<vmem>>, vector<256x128xbf16>,
    return
  }
  func.func @transform_0(%arg0: i32) -> (i32, i32) {
    %c0_i32 = arith.constant 0 : i32
    %c0_i32_0 = arith.constant 0 : i32
    return %arg0, %c0_i32 : i32, i32
  }
  func.func @transform_1(%arg0: i32) -> (i32, i32) {
    %c0_i32 = arith.constant 0 : i32
    %c0_i32_0 = arith.constant 0 : i32
    %c0_i32_1 = arith.constant 0 : i32
    return %c0_i32, %c0_i32_0 : i32, i32
  }
  func.func @transform_2(%arg0: i32) -> (i32, i32) {
    %c0_i32 = arith.constant 0 : i32
    %c0_i32_0 = arith.constant 0 : i32
    return %arg0, %c0_i32 : i32, i32
  }
}

</mosaic_0001>

<bundles_post_ra>
// kernel: tpu_custom_call.1
= control target key start
LH: loop header
LB: loop body
LE: loop exit
PB: predicated region body
PF: predicated region fallthrough
CT: control target
= control target key end

     0   :  { %7 = vsyncpa [#allocation3], 0  ;;  %s610_s0 = inlined_call_operand.hbm [shape: f32[256,128], index: 0, kind: input, shape index: {}]   ;;  %s611_s1 = inlined_call_operand.hbm [shape: bf16[128,128], index: 1, kind: input, shape index: {}]   ;;  %s612_s2 = inlined_call_operand.hbm [shape: bf16[256,128], index: 2, kind: output, shape index: {}]  }
   0x1   :  { %8 = vsyncpa [#allocation6], 0 }
   0x2   :  { %9 = vsyncpa [#allocation4], 0  ;;  %s14_s11 = sshll.u32 %s610_s0, 4  ;;  %s573_s12 = smov [#allocation2]   ;;  %s15_s11 = int_to_ptr.hbm [resolvable:$true] %s14_s11 }
   0x3   :  { %s16_s13 = sshll.u32 %s573_s12, 4  ;;  %s27_s16 = sshll.u32 %s611_s1, 4  ;;  %s17_s13 = int_to_ptr.vmem [resolvable:$true] %s16_s13  ;;  %s28_s16 = int_to_ptr.hbm [resolvable:$true] %s27_s16 }
   0x4   :  { %s574_s17 = smov 128   ;;  %s575_s18 = smov 8  }
   0x5   :  { %22 = dma.hbm_to_vmem [thread:$0]  %s15_s11, 4096, %s17_s13, [#allocation3], %s574_s17, %s574_s17, %s575_s18  }
   0x6   :  { %s576_s19 = smov [#allocation5]   ;;  %s577_s21 = smov 64  }
   0x7   :  { %s29_s20 = sshll.u32 %s576_s19, 4  ;;  %s578_s22 = smov 4   ;;  %s30_s20 = int_to_ptr.vmem [resolvable:$true] %s29_s20 }
   0x8   :  { %35 = dma.hbm_to_vmem [thread:$0]  %s28_s16, 1024, %s30_s20, [#allocation6], %s577_s21, %s577_s21, %s578_s22  }
   0x9   :  { %567 = dma.done.wait [#allocation3], 4096  }
   0xa   :  { %568 = vsyncadd [#allocation3], 4294963200 }
   0xb   :  { %569 = dma.done.wait [#allocation6], 1024  }
   0xc   :  { %570 = vsyncadd [#allocation6], 4294966272  ;;  %v368_v0 = vld [vmem:[#allocation5 + $0x38] sm:$0xff]  ;;  %v367_v1 = vld [vmem:[#allocation5 + $0x30] sm:$0xff]  ;;  %s579_s0 = smov [#allocation7]   ;;  %s315_s25 = sshll.u32 %s612_s2, 4  ;;  %s316_s25 = int_to_ptr.hbm [resolvable:$true] %s315_s25 }
   0xd   :  { %156 = vmatpush.bf16.msra.mxu0 %v368_v0  ;;  %464 = vmatpush.bf16.msra.mxu1 %v368_v0  ;;  %v366_v2 = vld [vmem:[#allocation5 + $0x28] sm:$0xff]  ;;  %v365_v3 = vld [vmem:[#allocation5 + $0x20] sm:$0xff]  ;;  %v364_v4 = vld [vmem:[#allocation5 + $0x18] sm:$0xff]  ;;  %s313_s1 = sshll.u32 %s579_s0, 4  ;;  %s314_s1 = int_to_ptr.vmem [resolvable:$true] %s313_s1 }
   0xe   :  { %465 = vmatpush.bf16.msra.mxu2 %v368_v0  ;;  %466 = vmatpush.bf16.msra.mxu3 %v368_v0  ;;  %v363_v5 = vld [vmem:[#allocation5 + $0x10] sm:$0xff]  ;;  %v362_v6 = vld [vmem:[#allocation5 + $0x8] sm:$0xff]  ;;  %v361_v7 = vld [vmem:[#allocation5] sm:$0xff] }
   0xf   :  { %v44_v8 = vld [vmem:[#allocation2] sm:$0xff]  ;;  %v45_v9 = vld [vmem:[#allocation2 + $0x8] sm:$0xff]  ;;  %v46_v20 = vld [vmem:[#allocation2 + $0x10] sm:$0xff] }
  0x10   :  { %v52_v10 = vld [vmem:[#allocation2 + $0x40] sm:$0xff]  ;;  %v53_v11 = vld [vmem:[#allocation2 + $0x48] sm:$0xff]  ;;  %v76_v16 = vpack.c.bf16 %v45_v9, %v44_v8  ;;  %v47_v21 = vld [vmem:[#allocation2 + $0x18] sm:$0xff] }
  0x11   :  { %157 = vmatpush.bf16.msra.mxu0 %v367_v1  ;;  %467 = vmatpush.bf16.msra.mxu1 %v367_v1  ;;  %v60_v12 = vld [vmem:[#allocation2 + $0x80] sm:$0xff]  ;;  %v61_v13 = vld [vmem:[#allocation2 + $0x88] sm:$0xff]  ;;  %v80_v17 = vpack.c.bf16 %v53_v11, %v52_v10  ;;  %v54_v22 = vld [vmem:[#allocation2 + $0x50] sm:$0xff]  ;;  %v77_v28 = vpack.c.bf16 %v47_v21, %v46_v20 }
  0x12   :  { %468 = vmatpush.bf16.msra.mxu2 %v367_v1  ;;  %469 = vmatpush.bf16.msra.mxu3 %v367_v1  ;;  %v68_v14 = vld [vmem:[#allocation2 + $0xc0] sm:$0xff]  ;;  %v69_v15 = vld [vmem:[#allocation2 + $0xc8] sm:$0xff]  ;;  %v84_v18 = vpack.c.bf16 %v61_v13, %v60_v12  ;;  %v55_v23 = vld [vmem:[#allocation2 + $0x58] sm:$0xff] }
  0x13   :  { %v88_v19 = vpack.c.bf16 %v69_v15, %v68_v14  ;;  %v62_v24 = vld [vmem:[#allocation2 + $0x90] sm:$0xff]  ;;  %v63_v25 = vld [vmem:[#allocation2 + $0x98] sm:$0xff]  ;;  %v81_v29 = vpack.c.bf16 %v55_v23, %v54_v22  ;;  %v48_v32 = vld [vmem:[#allocation2 + $0x20] sm:$0xff] }
  0x14   :  { %v70_v26 = vld [vmem:[#allocation2 + $0xd0] sm:$0xff]  ;;  %v71_v27 = vld [vmem:[#allocation2 + $0xd8] sm:$0xff]  ;;  %v85_v30 = vpack.c.bf16 %v63_v25, %v62_v24  ;;  %v49_v33 = vld [vmem:[#allocation2 + $0x28] sm:$0xff] }
  0x15   :  { %158 = vmatpush.bf16.msra.mxu0 %v366_v2  ;;  %470 = vmatpush.bf16.msra.mxu1 %v366_v2  ;;  %v89_v31 = vpack.c.bf16 %v71_v27, %v70_v26  ;;  %v56_v34 = vld [vmem:[#allocation2 + $0x60] sm:$0xff]  ;;  %v57_v35 = vld [vmem:[#allocation2 + $0x68] sm:$0xff]  ;;  %v78_v40 = vpack.c.bf16 %v49_v33, %v48_v32  ;;  %v50_v44 = vld [vmem:[#allocation2 + $0x30] sm:$0xff] }
  0x16   :  { %471 = vmatpush.bf16.msra.mxu2 %v366_v2  ;;  %472 = vmatpush.bf16.msra.mxu3 %v366_v2  ;;  %v64_v36 = vld [vmem:[#allocation2 + $0xa0] sm:$0xff]  ;;  %v65_v37 = vld [vmem:[#allocation2 + $0xa8] sm:$0xff]  ;;  %v82_v41 = vpack.c.bf16 %v57_v35, %v56_v34  ;;  %v51_v45 = vld [vmem:[#allocation2 + $0x38] sm:$0xff] }
  0x17   :  { %v72_v38 = vld [vmem:[#allocation2 + $0xe0] sm:$0xff]  ;;  %v73_v39 = vld [vmem:[#allocation2 + $0xe8] sm:$0xff]  ;;  %v86_v42 = vpack.c.bf16 %v65_v37, %v64_v36  ;;  %v58_v46 = vld [vmem:[#allocation2 + $0x70] sm:$0xff]  ;;  %v79_v52 = vpack.c.bf16 %v51_v45, %v50_v44 }
  0x18   :  { %v90_v43 = vpack.c.bf16 %v73_v39, %v72_v38  ;;  %v59_v47 = vld [vmem:[#allocation2 + $0x78] sm:$0xff]  ;;  %v66_v48 = vld [vmem:[#allocation2 + $0xb0] sm:$0xff] }
  0x19   :  { %159 = vmatpush.bf16.msra.mxu0 %v365_v3  ;;  %473 = vmatpush.bf16.msra.mxu1 %v365_v3  ;;  %v67_v49 = vld [vmem:[#allocation2 + $0xb8] sm:$0xff]  ;;  %v74_v50 = vld [vmem:[#allocation2 + $0xf0] sm:$0xff]  ;;  %v83_v53 = vpack.c.bf16 %v59_v47, %v58_v46 }
  0x1a   :  { %474 = vmatpush.bf16.msra.mxu2 %v365_v3  ;;  %475 = vmatpush.bf16.msra.mxu3 %v365_v3  ;;  %v75_v51 = vld [vmem:[#allocation2 + $0xf8] sm:$0xff]  ;;  %v87_v54 = vpack.c.bf16 %v67_v49, %v66_v48 }
  0x1b   :  { %v91_v55 = vpack.c.bf16 %v75_v51, %v74_v50 }
  0x1d   :  { %160 = vmatpush.bf16.msra.mxu0 %v364_v4  ;;  %476 = vmatpush.bf16.msra.mxu1 %v364_v4 }
  0x1e   :  { %477 = vmatpush.bf16.msra.mxu2 %v364_v4  ;;  %478 = vmatpush.bf16.msra.mxu3 %v364_v4 }
  0x21   :  { %161 = vmatpush.bf16.msra.mxu0 %v363_v5  ;;  %479 = vmatpush.bf16.msra.mxu1 %v363_v5 }
  0x22   :  { %480 = vmatpush.bf16.msra.mxu2 %v363_v5  ;;  %481 = vmatpush.bf16.msra.mxu3 %v363_v5 }
  0x25   :  { %162 = vmatpush.bf16.msra.mxu0 %v362_v6  ;;  %482 = vmatpush.bf16.msra.mxu1 %v362_v6 }
  0x26   :  { %483 = vmatpush.bf16.msra.mxu2 %v362_v6  ;;  %484 = vmatpush.bf16.msra.mxu3 %v362_v6 }
  0x29   :  { %163 = vmatpush.bf16.msra.mxu0 %v361_v7  ;;  %485 = vmatpush.bf16.msra.mxu1 %v361_v7 }
  0x2a   :  { %486 = vmatpush.bf16.msra.mxu2 %v361_v7  ;;  %487 = vmatpush.bf16.msra.mxu3 %v361_v7 }
  0x2c   :  { %164 = vmatmul.bf16.vlgmr.msra.gmra.mxu0 %v76_v16  ;;  %184 = vmatmul.bf16.vlgmr.msra.gmra.mxu1 %v80_v17 }
  0x2d   :  { %204 = vmatmul.bf16.vlgmr.msra.gmra.mxu2 %v84_v18  ;;  %224 = vmatmul.bf16.vlgmr.msra.gmra.mxu3 %v88_v19 }
  0x3c   :  { %169 = vmatmul.bf16.gmra.mxu0 %v77_v28  ;;  %189 = vmatmul.bf16.gmra.mxu1 %v81_v29 }
  0x3d   :  { %209 = vmatmul.bf16.gmra.mxu2 %v85_v30  ;;  %229 = vmatmul.bf16.gmra.mxu3 %v89_v31 }
  0x4c   :  { %174 = vmatmul.bf16.gmra.mxu0 %v78_v40  ;;  %194 = vmatmul.bf16.gmra.mxu1 %v82_v41 }
  0x4d   :  { %214 = vmatmul.bf16.gmra.mxu2 %v86_v42  ;;  %234 = vmatmul.bf16.gmra.mxu3 %v90_v43 }
  0x5c   :  { %179 = vmatmul.bf16.gmra.mxu0 %v79_v52  ;;  %199 = vmatmul.bf16.gmra.mxu1 %v83_v53 }
  0x5d   :  { %219 = vmatmul.bf16.gmra.mxu2 %v87_v54  ;;  %239 = vmatmul.bf16.gmra.mxu3 %v91_v55 }
  0xa9   :  { %v165_v56 = vpop.f32.mrf.mxu0  ;;  %v185_v57 = vpop.f32.mrf.mxu1 }
  0xb0   :  { %v205_v58 = vpop.f32.mrf.mxu2  ;;  %v225_v59 = vpop.f32.mrf.mxu3 }
  0xb1   :  { %v167_v60 = vpop.f32.mrf.mxu0  ;;  %v187_v61 = vpop.f32.mrf.mxu1 }
  0xb2   :  { %v372_v62 = vpack.c.bf16 %v167_v60, %v165_v56  ;;  %v392_v63 = vpack.c.bf16 %v187_v61, %v185_v57 }
  0xb4   :  { %373 = vst [vmem:[#allocation7] sm:$0xff] %v372_v62  }
  0xb5   :  { %452 = vst [vmem:[#allocation7 + $0x20] sm:$0xff] %v392_v63  }
  0xb8   :  { %v207_v0 = vpop.f32.mrf.mxu2  ;;  %v227_v1 = vpop.f32.mrf.mxu3 }
  0xb9   :  { %v412_v2 = vpack.c.bf16 %v207_v0, %v205_v58  ;;  %v432_v3 = vpack.c.bf16 %v227_v1, %v225_v59  ;;  %v170_v4 = vpop.f32.mrf.mxu0  ;;  %v190_v5 = vpop.f32.mrf.mxu1 }
  0xbb   :  { %456 = vst [vmem:[#allocation7 + $0x40] sm:$0xff] %v412_v2  }
  0xbc   :  { %460 = vst [vmem:[#allocation7 + $0x60] sm:$0xff] %v432_v3  }
  0xc0   :  { %v210_v6 = vpop.f32.mrf.mxu2  ;;  %v230_v7 = vpop.f32.mrf.mxu3 }
  0xc1   :  { %v172_v8 = vpop.f32.mrf.mxu0  ;;  %v192_v9 = vpop.f32.mrf.mxu1 }
  0xc2   :  { %v377_v10 = vpack.c.bf16 %v172_v8, %v170_v4  ;;  %v397_v11 = vpack.c.bf16 %v192_v9, %v190_v5 }
  0xc4   :  { %449 = vst [vmem:[#allocation7 + $0x8] sm:$0xff] %v377_v10  }
  0xc5   :  { %453 = vst [vmem:[#allocation7 + $0x28] sm:$0xff] %v397_v11  }
  0xc8   :  { %v212_v12 = vpop.f32.mrf.mxu2  ;;  %v232_v13 = vpop.f32.mrf.mxu3 }
  0xc9   :  { %v417_v14 = vpack.c.bf16 %v212_v12, %v210_v6  ;;  %v437_v15 = vpack.c.bf16 %v232_v13, %v230_v7  ;;  %v175_v16 = vpop.f32.mrf.mxu0  ;;  %v195_v17 = vpop.f32.mrf.mxu1 }
  0xcb   :  { %457 = vst [vmem:[#allocation7 + $0x48] sm:$0xff] %v417_v14  }
  0xcc   :  { %461 = vst [vmem:[#allocation7 + $0x68] sm:$0xff] %v437_v15  }
  0xd0   :  { %v215_v18 = vpop.f32.mrf.mxu2  ;;  %v235_v19 = vpop.f32.mrf.mxu3 }
  0xd1   :  { %v177_v20 = vpop.f32.mrf.mxu0  ;;  %v197_v21 = vpop.f32.mrf.mxu1 }
  0xd2   :  { %v382_v22 = vpack.c.bf16 %v177_v20, %v175_v16  ;;  %v402_v23 = vpack.c.bf16 %v197_v21, %v195_v17 }
  0xd4   :  { %450 = vst [vmem:[#allocation7 + $0x10] sm:$0xff] %v382_v22  }
  0xd5   :  { %454 = vst [vmem:[#allocation7 + $0x30] sm:$0xff] %v402_v23  }
  0xd8   :  { %v217_v24 = vpop.f32.mrf.mxu2  ;;  %v237_v25 = vpop.f32.mrf.mxu3 }
  0xd9   :  { %v422_v26 = vpack.c.bf16 %v217_v24, %v215_v18  ;;  %v442_v27 = vpack.c.bf16 %v237_v25, %v235_v19  ;;  %v180_v28 = vpop.f32.mrf.mxu0  ;;  %v200_v29 = vpop.f32.mrf.mxu1 }
  0xdb   :  { %458 = vst [vmem:[#allocation7 + $0x50] sm:$0xff] %v422_v26  }
  0xdc   :  { %462 = vst [vmem:[#allocation7 + $0x70] sm:$0xff] %v442_v27  }
  0xe0   :  { %v220_v30 = vpop.f32.mrf.mxu2  ;;  %v240_v31 = vpop.f32.mrf.mxu3 }
  0xe1   :  { %v182_v32 = vpop.f32.mrf.mxu0  ;;  %v202_v33 = vpop.f32.mrf.mxu1 }
  0xe2   :  { %v387_v34 = vpack.c.bf16 %v182_v32, %v180_v28  ;;  %v407_v35 = vpack.c.bf16 %v202_v33, %v200_v29 }
  0xe4   :  { %451 = vst [vmem:[#allocation7 + $0x18] sm:$0xff] %v387_v34  }
  0xe5   :  { %455 = vst [vmem:[#allocation7 + $0x38] sm:$0xff] %v407_v35  }
  0xe8   :  { %v222_v36 = vpop.f32.mrf.mxu2  ;;  %v242_v37 = vpop.f32.mrf.mxu3 }
  0xe9   :  { %v427_v38 = vpack.c.bf16 %v222_v36, %v220_v30  ;;  %v447_v39 = vpack.c.bf16 %v242_v37, %v240_v31 }
  0xeb   :  { %459 = vst [vmem:[#allocation7 + $0x58] sm:$0xff] %v427_v38  }
  0xec   :  { %463 = vst [vmem:[#allocation7 + $0x78] sm:$0xff] %v447_v39  }
  0xed   :  { %321 = dma.vmem_to_hbm [thread:$0]  %s314_s1, 2048, %s316_s25, [#allocation4], %s577_s21, %s577_s21, %s578_s22  }
  0xee   :  { %571 = dma.done.wait [#allocation4], 2048  }
  0xef   :  { %572 = vsyncadd [#allocation4], 4294965248 }
  0xf0   :  { %326 = vsyncpa [#allocation3], 1 }
  0xf1   :  { %327 = vsyncpa [#allocation6], 1 }
  0xf2   :  { %328 = vsyncpa [#allocation4], 1 }

</bundles_post_ra>
